<compile_context>
chip_gen: v6e
topology: v6e:2x2x1
jax: 0.10.0
libtpu: 0.0.40
codegen_flags: <defaults>
</compile_context>

<pallas_src>
import functools

import jax
import jax.numpy as jnp
from jax import lax
from jax.experimental import pallas as pl
from jax.experimental.pallas import tpu as pltpu


_SINGLE_TILE_BYTES = 1 << 20   # <= 1 MiB: whole input in one VMEM tile, no grid
_TILE_TARGET_BYTES = 8 << 20   # ~8 MiB per (double-buffered) input row tile
_VMEM_LIMIT_BYTES = 32 << 20   # explicit scoped-VMEM limit, safe on v5e/v6e/v7x


def _fold_lane_groups(s, d_orig, fold_groups):
    """Fold a (1, fold_groups*d_orig) packed row-sum back to the true (1, d_orig)."""
    if fold_groups == 1:
        return s
    folded = s[:, 0:d_orig]
    for g in range(1, fold_groups):
        folded = folded + s[:, g * d_orig:(g + 1) * d_orig]
    return folded


# ---------------------------------------------------------------------------
# Small path: whole (rows, cols) view resident in one VMEM tile, no grid.
# ---------------------------------------------------------------------------
def _proxcos_single_kernel(x_ref, o_ref, *, scale, d_orig, fold_groups):
    x = x_ref[...].astype(jnp.float32)            # cast per-vreg inside the kernel
    s = jnp.sum(x, axis=0, keepdims=True)         # (1, C) packed row-sum
    s = _fold_lane_groups(s, d_orig, fold_groups)  # (1, D) true row-sum
    total = jnp.sum(s * s, keepdims=True)         # (1, 1) == sum(G)
    diag = jnp.sum(x * x, keepdims=True)          # (1, 1) == trace(G)
    o_ref[...] = (total - diag) * scale           # single (1, 1) store


def _proxcos_single(x, *, scale, d_orig, fold_groups):
    rows, cols = x.shape
    kernel = functools.partial(
        _proxcos_single_kernel, scale=scale, d_orig=d_orig, fold_groups=fold_groups)
    out = pl.pallas_call(
        kernel,
        out_shape=jax.ShapeDtypeStruct((1, 1), jnp.float32),
        in_specs=[pl.BlockSpec(memory_space=pltpu.MemorySpace.VMEM)],
        out_specs=pl.BlockSpec(memory_space=pltpu.MemorySpace.VMEM),
        cost_estimate=pl.CostEstimate(
            flops=3 * rows * cols, transcendentals=0,
            bytes_accessed=rows * cols * x.dtype.itemsize + 4),
    )(x)
    return out[0, 0]


# ---------------------------------------------------------------------------
# Large path: 1-D grid over row blocks, O(N*D) streaming reduction.
# VMEM stays bounded at ~2 row tiles; nothing N x N is ever materialized.
# ---------------------------------------------------------------------------
def _proxcos_tiled_kernel(x_ref, o_ref, s_acc, ssq_acc, *,
                          n_rows, block_rows, scale, d_orig, fold_groups):
    i = pl.program_id(0)
    last = pl.num_programs(0) - 1

    @pl.when(i == 0)
    def _init():
        s_acc[...] = jnp.zeros_like(s_acc)
        ssq_acc[...] = jnp.zeros_like(ssq_acc)

    def _accumulate(x):
        # Per-lane accumulators: pure VALU adds, hidden under the input DMA.
        s_acc[...] = s_acc[...] + jnp.sum(x, axis=0, keepdims=True)
        ssq_acc[...] = ssq_acc[...] + jnp.sum(x * x, axis=0, keepdims=True)

    if n_rows % block_rows != 0:
        # Only the last tile is partial: mask it there and nowhere else.
        @pl.when(i != last)
        def _full_tile():
            _accumulate(x_ref[...].astype(jnp.float32))

        @pl.when(i == last)
        def _partial_tile():
            x = x_ref[...].astype(jnp.float32)
            row_ids = (i * block_rows
                       + lax.broadcasted_iota(jnp.int32, (block_rows, 1), 0))
            x = jnp.where(row_ids < n_rows, x, 0.0)
            _accumulate(x)
    else:
        _accumulate(x_ref[...].astype(jnp.float32))

    @pl.when(i == last)
    def _finalize():
        s = _fold_lane_groups(s_acc[...], d_orig, fold_groups)   # (1, D)
        total = jnp.sum(s * s, keepdims=True)                    # (1, 1) sum(G)
        diag = jnp.sum(ssq_acc[...], keepdims=True)              # (1, 1) trace(G)
        o_ref[...] = (total - diag) * scale                      # single store


def _proxcos_tiled(x, *, block_rows, scale, d_orig, fold_groups):
    rows, cols = x.shape
    num_blocks = pl.cdiv(rows, block_rows)
    kernel = functools.partial(
        _proxcos_tiled_kernel, n_rows=rows, block_rows=block_rows,
        scale=scale, d_orig=d_orig, fold_groups=fold_groups)
    out = pl.pallas_call(
        kernel,
        out_shape=jax.ShapeDtypeStruct((1, 1), jnp.float32),
        grid=(num_blocks,),
        in_specs=[pl.BlockSpec((block_rows, cols), lambda i: (i, 0))],
        out_specs=pl.BlockSpec((1, 1), lambda i: (0, 0)),
        scratch_shapes=[
            pltpu.VMEM((1, cols), jnp.float32),   # running packed row-sum
            pltpu.VMEM((1, cols), jnp.float32),   # running per-lane sum of squares
        ],
        compiler_params=pltpu.CompilerParams(
            dimension_semantics=("arbitrary",),    # sequential reduction axis
            vmem_limit_bytes=_VMEM_LIMIT_BYTES),
        cost_estimate=pl.CostEstimate(
            flops=3 * rows * cols, transcendentals=0,
            bytes_accessed=rows * cols * x.dtype.itemsize + 4),
    )(x)
    return out[0, 0]


# ---------------------------------------------------------------------------
# Public wrapper (matches ProxCos.forward; the module's `k`/`device` args are
# unused by the forward pass).
# ---------------------------------------------------------------------------
def proxcos(x, *, block_rows=None):
    """x: (N, D) float array -> scalar float32 ProxCos loss.

    `block_rows` optionally overrides the packed-row tile height and forces the
    tiled path (testing / tuning only).
    """
    x = jnp.asarray(x)
    if x.ndim != 2:
        raise ValueError(f"proxcos expects a 2-D (N, D) input, got {x.shape}")
    n, d = x.shape
    scale = 0.5 / (float(n) * float(n))   # mean over N*N entries, compile-time

    # Lane-dense packing: view (N, D) as (N*D/128, 128) (free row-major reshape)
    # when D < 128 divides 128, so vregs and DMA bytes are fully utilised.
    fold_groups = 1
    d_orig = d
    if d < 128 and 128 % d == 0 and n % (128 // d) == 0:
        fold_groups = 128 // d
        x = x.reshape(n // fold_groups, 128)
    rows, cols = x.shape

    row_bytes = cols * x.dtype.itemsize
    total_bytes = rows * row_bytes

    if block_rows is None:
        if total_bytes <= _SINGLE_TILE_BYTES:
            return _proxcos_single(x, scale=scale, d_orig=d_orig,
                                   fold_groups=fold_groups)
        # ~8 MiB row tiles, multiple of 16 rows (covers f32 (8,128) and bf16
        # (16,128) sublane packing). Floor of 16 rows caps very-large-D tiles.
        block_rows = max(16, (_TILE_TARGET_BYTES // row_bytes) // 16 * 16)
        block_rows = min(block_rows, max(16, pl.cdiv(rows, 16) * 16))
    return _proxcos_tiled(x, block_rows=block_rows, scale=scale,
                          d_orig=d_orig, fold_groups=fold_groups)


if __name__ == "__main__":
    import numpy as np

    def ref_loss(x_np):
        xf = np.asarray(x_np, dtype=np.float64)
        g = xf @ xf.T
        n = xf.shape[0]
        return float(np.triu(g, k=1).sum() / (n * n))

    key = jax.random.PRNGKey(0)
    k1, k2, k3 = jax.random.split(key, 3)

    # 1) Small shape consistent with the module (N=8 samples, D=32 features):
    #    lane-packed (2, 128) single-tile path.
    x_small = jax.random.normal(k1, (8, 32), dtype=jnp.float32)
    loss = proxcos(x_small)
    jax.block_until_ready(loss)
    ref = ref_loss(np.asarray(x_small))
    assert np.allclose(float(loss), ref, rtol=1e-5, atol=1e-6), (float(loss), ref)

    # 2) Tiled path with a partial last row block (packed rows = 25, block 16),
    #    exercising accumulator init/finalize and last-step-only masking.
    x_big = jax.random.normal(k2, (100, 32), dtype=jnp.float32)
    loss_big = proxcos(x_big, block_rows=16)
    jax.block_until_ready(loss_big)
    ref_big = ref_loss(np.asarray(x_big))
    assert np.allclose(float(loss_big), ref_big, rtol=1e-5, atol=1e-6), (
        float(loss_big), ref_big)

    # 3) Un-packable feature width (D=48 does not divide 128): fold_groups == 1.
    x_odd = jax.random.normal(k3, (24, 48), dtype=jnp.float32)
    loss_odd = proxcos(x_odd)
    jax.block_until_ready(loss_odd)
    ref_odd = ref_loss(np.asarray(x_odd))
    assert np.allclose(float(loss_odd), ref_odd, rtol=1e-5, atol=1e-6), (
        float(loss_odd), ref_odd)

    # 4) bf16 input read directly by the kernel (no wrapper pre-cast).
    x_bf16 = x_big.astype(jnp.bfloat16)
    loss_bf16 = proxcos(x_bf16, block_rows=16)
    jax.block_until_ready(loss_bf16)
    ref_bf16 = ref_loss(np.asarray(x_bf16.astype(jnp.float32)))
    assert np.allclose(float(loss_bf16), ref_bf16, rtol=1e-4, atol=1e-5), (
        float(loss_bf16), ref_bf16)

    print("KERNEL_OK")
</pallas_src>

<mosaic_0001>
module attributes {stable_mosaic.version = 11 : i64} {
  func.func @_proxcos_single_kernel(%arg0: memref<2x128xf32, #tpu.memory_space<vmem>>, %arg1: memref<1x1xf32, #tpu.memory_space<vmem>>) attributes {dimension_semantics = [], scalar_prefetch = 0 : i64, scratch_operands = 0 : i64, tpu.core_type = #tpu.core_type<tc>} {
    %c0 = arith.constant 0 : index
    %c0_0 = arith.constant 0 : index
    %0 = vector.load %arg0[%c0, %c0_0] : memref<2x128xf32, #tpu.memory_space<vmem>>, vector<2x128xf32>
    %cst = arith.constant dense<0.000000e+00> : vector<128xf32>
    %1 = vector.multi_reduction <add>, %0, %cst [0] : vector<2x128xf32> to vector<128xf32>
    %2 = vector.shape_cast %1 : vector<128xf32> to vector<1x128xf32>
    %3 = vector.extract_strided_slice %2 {offsets = [0, 0], sizes = [1, 32], strides = [1, 1]} : vector<1x128xf32> to vector<1x32xf32>
    %4 = vector.extract_strided_slice %2 {offsets = [0, 32], sizes = [1, 32], strides = [1, 1]} : vector<1x128xf32> to vector<1x32xf32>
    %5 = arith.addf %3, %4 : vector<1x32xf32>
    %6 = vector.extract_strided_slice %2 {offsets = [0, 64], sizes = [1, 32], strides = [1, 1]} : vector<1x128xf32> to vector<1x32xf32>
    %7 = arith.addf %5, %6 : vector<1x32xf32>
    %8 = vector.extract_strided_slice %2 {offsets = [0, 96], sizes = [1, 32], strides = [1, 1]} : vector<1x128xf32> to vector<1x32xf32>
    %9 = arith.addf %7, %8 : vector<1x32xf32>
    %10 = arith.mulf %9, %9 : vector<1x32xf32>
    %11 = vector.shape_cast %10 : vector<1x32xf32> to vector<1x1x32xf32>
    %cst_1 = arith.constant dense<0.000000e+00> : vector<1xf32>
    %12 = vector.multi_reduction <add>, %11, %cst_1 [1, 2] : vector<1x1x32xf32> to vector<1xf32>
    %13 = vector.shape_cast %12 : vector<1xf32> to vector<1x1x1xf32>
    %14 = vector.extract %13[0, 0, 0] : f32 from vector<1x1x1xf32>
    %15 = vector.broadcast %14 : f32 to vector<1x1xf32>
    %16 = arith.mulf %0, %0 : vector<2x128xf32>
    %17 = vector.shape_cast %16 : vector<2x128xf32> to vector<1x2x128xf32>
    %cst_2 = arith.constant dense<0.000000e+00> : vector<1xf32>
    %18 = vector.multi_reduction <add>, %17, %cst_2 [1, 2] : vector<1x2x128xf32> to vector<1xf32>
    %19 = vector.shape_cast %18 : vector<1xf32> to vector<1x1x1xf32>
    %20 = vector.extract %19[0, 0, 0] : f32 from vector<1x1x1xf32>
    %21 = vector.broadcast %20 : f32 to vector<1x1xf32>
    %22 = arith.subf %15, %21 : vector<1x1xf32>
    %cst_3 = arith.constant 7.812500e-03 : f32
    %23 = vector.broadcast %cst_3 : f32 to vector<1x1xf32>
    %24 = arith.mulf %22, %23 : vector<1x1xf32>
    %c0_4 = arith.constant 0 : index
    %c0_5 = arith.constant 0 : index
    %25 = vector.load %arg1[%c0_4, %c0_5] : memref<1x1xf32, #tpu.memory_space<vmem>>, vector<1x1xf32>
    tpu.vector_store %arg1[%c0_4, %c0_5], %24 {strides = array<i32>} : memref<1x1xf32, #tpu.memory_space<vmem>>, vector<1x1xf32>,
    return
  }
}

</mosaic_0001>

<bundles_post_ra>
// kernel: tpu_custom_call.1
= control target key start
LH: loop header
LB: loop body
LE: loop exit
PB: predicated region body
PF: predicated region fallthrough
CT: control target
= control target key end

     0   :  { %6 = vsyncpa [#allocation3], 0  ;;  %s163_s0 = inlined_call_operand.hbm [shape: f32[2,128], index: 0, kind: input, shape index: {}]   ;;  %s164_s1 = inlined_call_operand.hbm [shape: f32[1,1], index: 1, kind: output, shape index: {}]  }
   0x1   :  { %7 = vsyncpa [#allocation4], 0  ;;  %s140_s6 = smov [#allocation2]  }
   0x2   :  { %s14_s7 = sshll.u32 %s140_s6, 4  ;;  %s15_s7 = int_to_ptr.vmem [resolvable:$true] %s14_s7 }
   0x3   :  { %s104_s8 = scalar_lea.vmem %s15_s7, 32  ;;  %p109_p1 = scmp.lt.s32.totalorder %s15_s7, %s15_s7 }
   0x4   :  { %p105_p0 = scmp.ne.s32.totalorder %s15_s7, %s104_s8  ;;  %p110_p2 = scmp.lt.s32.totalorder %s104_s8, %s104_s8 }
   0x6   :  { %p111_p3 = por %p110_p2, %p109_p1 }
   0x8   :  { %p112_p4 = pnand %p111_p3, %p105_p0 }
   0xa   :  { %115 = shalt.err (!%p112_p4)
}
   0xb   :  { %17 = dma.hbm_to_vmem [thread:$0]  %s163_s0, 32, %s15_s7, [#allocation3]  }
   0xc   :  { %136 = dma.done.wait [#allocation3], 32  }
   0xd   :  { %137 = vsyncadd [#allocation3], 4294967264  ;;  %vm22_vm0 = vcmask 1041408   ;;  %v21_v0 = vld [vmem:[#allocation2] sm:$0x3]  ;;  %s141_s11 = smov 96  }
   0xe   :  { %v23_v1 = vsel %vm22_vm0, %v21_v0, 0.0  ;;  %s142_s12 = smov 32   ;;  %s143_s13 = smov 64   ;;  %v56_v8 = vmul.f32 %v21_v0, %v21_v0  ;;  %vm44_vm1 = vcmask 253952   ;;  %vm70_vm2 = vcmask 0  }
   0xf   :  { %v24_v2 = vrot.slane %v23_v1, 4  ;;  %s144_s15 = smov [#allocation5]  }
  0x10   :  { %v57_v9 = vsel %vm22_vm0, %v56_v8, 0.0  ;;  %s78_s16 = sshll.u32 %s144_s15, 4  ;;  %s79_s16 = int_to_ptr.vmem [resolvable:$true] %s78_s16 }
  0x11   :  { %v25_v3 = vadd.f32 %v24_v2, %v23_v1  ;;  %s116_s17 = scalar_lea.vmem %s79_s16, 16  ;;  %s120_s18 = scalar_lea.vmem %s79_s16, 32 }
  0x12   :  { %p117_p5 = scmp.ne.s32.totalorder %s79_s16, %s116_s17  ;;  %p121_p6 = scmp.lt.s32.totalorder %s79_s16, %s79_s16 }
  0x13   :  { %v26_v4 = vrot.slane %v25_v3, 2  ;;  %p122_p7 = scmp.lt.s32.totalorder %s120_s18, %s116_s17 }
  0x15   :  { %v27_v5 = vadd.f32 %v26_v4, %v25_v3  ;;  %p123_p8 = por %p122_p7, %p121_p6 }
  0x17   :  { %v28_v6 = vrot.slane %v27_v5, 1  ;;  %p124_p9 = pnand %p123_p8, %p117_p5 }
  0x19   :  { %v29_v7 = vadd.f32 %v28_v6, %v27_v5 }
  0x1b   :  { %31 = vrot.lane.b32.xlu0 %v29_v7, %s141_s11  ;;  %39 = vrot.lane.b32.xlu1 %v29_v7, %s142_s12 }
  0x1f   :  { %35 = vrot.lane.b32.xlu0 %v29_v7, %s143_s13 }
  0x3e   :  { %58 = vadd.xlane.f32.xlu0 %v57_v9 }
  0x8d   :  { %v32_v10 = vpop.permute.xlu0 %31  ;;  %v40_v13 = vpop.permute.xlu1 %39 }
  0x8e   :  { %v34_v11 = vadd.f32 %v32_v10, %v29_v7 }
  0x91   :  { %v36_v12 = vpop.permute.xlu0 %35 }
  0x92   :  { %v38_v14 = vadd.f32 %v36_v12, %v34_v11 }
  0x94   :  { %v42_v15 = vadd.f32 %v40_v13, %v38_v14 }
  0x96   :  { %v43_v16 = vmul.f32 %v42_v15, %v42_v15 }
  0x98   :  { %v45_v17 = vsel %vm44_vm1, %v43_v16, 0.0 }
  0x99   :  { %46 = vadd.xlane.f32.xlu1 %v45_v17 }
  0xc7   :  { %v59_v18 = vpop.xlane.xlu0 %58 }
  0xc8   :  { %v60_v19 = vrot.slane %v59_v18, 4 }
  0xca   :  { %v61_v20 = vadd.f32 %v60_v19, %v59_v18 }
  0xcc   :  { %v62_v21 = vrot.slane %v61_v20, 2 }
  0xce   :  { %v63_v25 = vadd.f32 %v62_v21, %v61_v20 }
  0xd0   :  { %v64_v28 = vrot.slane %v63_v25, 1 }
  0xd2   :  { %v65_v31 = vadd.f32 %v64_v28, %v63_v25 }
 0x122   :  { %v47_v22 = vpop.xlane.xlu1 %46 }
 0x123   :  { %v48_v23 = vrot.slane %v47_v22, 4 }
 0x125   :  { %v49_v24 = vadd.f32 %v48_v23, %v47_v22 }
 0x127   :  { %v50_v26 = vrot.slane %v49_v24, 2 }
 0x129   :  { %v51_v27 = vadd.f32 %v50_v26, %v49_v24 }
 0x12b   :  { %v52_v29 = vrot.slane %v51_v27, 1 }
 0x12d   :  { %v53_v30 = vadd.f32 %v52_v29, %v51_v27 }
 0x12f   :  { %87 = vpush %v53_v30 }
 0x130   :  { %89 = vpush %v65_v31 }
 0x160   :  { %s88_s0 = spop %87 }
 0x161   :  { %v55_v32 = vstv %s88_s0  ;;  %s90_s14 = spop %89 }
 0x162   :  { %v67_v33 = vstv %s90_s14 }
 0x163   :  { %v68_v34 = vsub.f32 %v55_v32, %v67_v33 }
 0x165   :  { %v69_v35 = vmul.f32 0.0078125, %v68_v34 }
 0x167   :  { %71 = vst.msk [vmem:[#allocation5] sm:$0x1] %vm70_vm2, %v69_v35 }
 0x168   :  { %127 = shalt.err (!%p124_p9)
}
 0x169   :  { %81 = dma.vmem_to_hbm [thread:$0]  %s79_s16, 16, %s164_s1, [#allocation4]  }
 0x16a   :  { %138 = dma.done.wait [#allocation4], 16  }
 0x16b   :  { %139 = vsyncadd [#allocation4], 4294967280 }
 0x16c   :  { %85 = vsyncpa [#allocation3], 1 }
 0x16d   :  { %86 = vsyncpa [#allocation4], 1 }

</bundles_post_ra>
